<compile_context>
chip_gen: v5e
topology: v5e:2x2
jax: 0.10.0
libtpu: 0.0.40
codegen_flags: <defaults>
</compile_context>

<pallas_src>
import functools

import jax
import jax.numpy as jnp
from jax.experimental import pallas as pl
from jax.experimental.pallas import tpu as pltpu


# ----------------------------------------------------------------------------
# Fused Pallas kernel
# ----------------------------------------------------------------------------
def _basic_block_kernel(*refs, stride, has_proj):
    """Fused BasicBlock1D forward for a (B_TILE, C, L) batch tile (NCL layout).

    stride == 1: x_ref block is (B, C_in, L)
    stride == 2: x_ref block is (B, 2, C_in, L1) -- even/odd phases of x
    Weights are (K, C_out, C_in) with BN scale already folded in; biases are
    (C_out, 1) f32.  Output block is (B, C_out, L1).
    """
    if has_proj:
        x_ref, w1_ref, b1_ref, w2_ref, b2_ref, ws_ref, bs_ref, o_ref = refs
    else:
        x_ref, w1_ref, b1_ref, w2_ref, b2_ref, o_ref = refs
        ws_ref = bs_ref = None

    B, C_out, L1 = o_ref.shape
    f32 = jnp.float32

    w1 = w1_ref[...]                       # (3, C_out, C_in), compute dtype
    w2 = w2_ref[...]                       # (3, C_out, C_out)
    b1 = b1_ref[...]                       # (C_out, 1) f32
    b2 = b2_ref[...]
    if has_proj:
        ws = ws_ref[...]                   # (C_out, C_in)
        bs = bs_ref[...]                   # (C_out, 1)
    cdt = w1.dtype                         # matmul input dtype (f32 or bf16)

    def mm(w, a):
        # (C_out, C) @ (C, L1) on the MXU, f32 accumulation.
        return jnp.dot(w, a.astype(cdt), preferred_element_type=f32)

    for b in range(B):                     # small static unrolled batch loop
        # ---- conv1 (K=3, padding=1) + bn1 (folded) + ReLU -----------------
        if stride == 1:
            xb = x_ref[b]                                  # (C_in, L)
            c_in = xb.shape[0]
            zc = jnp.zeros((c_in, 1), xb.dtype)
            xp = jnp.concatenate([zc, xb, zc], axis=1)     # (C_in, L+2)
            acc1 = (mm(w1[0], xp[:, 0:L1])
                    + mm(w1[1], xp[:, 1:L1 + 1])
                    + mm(w1[2], xp[:, 2:L1 + 2]))
            x_sc = xb                                      # shortcut source
        else:  # stride == 2: phase-split input, contiguous lane slices only
            xbp = x_ref[b]                                 # (2, C_in, L1)
            xe, xo = xbp[0], xbp[1]                        # even / odd phases
            c_in = xe.shape[0]
            zc = jnp.zeros((c_in, 1), xe.dtype)
            xo_shift = jnp.concatenate([zc, xo[:, :L1 - 1]], axis=1)
            acc1 = mm(w1[0], xo_shift) + mm(w1[1], xe) + mm(w1[2], xo)
            x_sc = xe                                      # x[:, ::2]

        h = jnp.maximum(acc1 + b1, 0.0)                    # (C_out, L1) f32
        # Dropout: eval mode -> identity.
        # TODO(synk): training-mode stochastic dropout not implemented.

        # ---- conv2 (K=3, stride=1, padding=1) + bn2 (folded) --------------
        zo = jnp.zeros((C_out, 1), f32)
        hp = jnp.concatenate([zo, h, zo], axis=1)          # (C_out, L1+2)
        acc2 = (mm(w2[0], hp[:, 0:L1])
                + mm(w2[1], hp[:, 1:L1 + 1])
                + mm(w2[2], hp[:, 2:L1 + 2]))
        y = acc2 + b2

        # ---- shortcut + residual add + ReLU -------------------------------
        if has_proj:
            sc = mm(ws, x_sc) + bs
        else:
            sc = x_sc.astype(f32)
        o_ref[b] = jnp.maximum(y + sc, 0.0).astype(o_ref.dtype)


# ----------------------------------------------------------------------------
# Wrapper
# ----------------------------------------------------------------------------
_BN_EPS = 1e-5  # PyTorch BatchNorm1d default


def _fold_bn(bn):
    s = bn["gamma"] * jax.lax.rsqrt(bn["var"] + _BN_EPS)
    b = bn["beta"] - bn["mean"] * s
    return s, b


def _prep_conv_weights(w_oik, scale, compute_dtype):
    # (C_out, C_in, K) -> (K, C_out, C_in), BN scale folded into output chans.
    w = jnp.transpose(w_oik, (2, 0, 1)) * scale[None, :, None]
    return w.astype(compute_dtype)


def _largest_divisor(n, cap):
    for d in range(min(n, cap), 0, -1):
        if n % d == 0:
            return d
    return 1


def basic_block_1d(x_ncl, params, stride, *, compute_dtype=jnp.float32,
                   batch_tile=8, vmem_limit_bytes=None):
    """x_ncl: (N, C_in, L) like the PyTorch module; returns (N, planes, L_out)."""
    N, C_in, L = x_ncl.shape
    C_out, _, K = params["w1"].shape
    assert K == 3, "BasicBlock1D uses 3-tap convs"
    assert stride in (1, 2), "TODO(synk): only stride 1 and 2 are implemented"
    if stride == 2:
        assert L % 2 == 0, "TODO(synk): odd lengths with stride=2 not implemented"
    L1 = (L + 2 - K) // stride + 1

    # Fold BN (eval-mode running stats) into weights / biases.
    s1, b1 = _fold_bn(params["bn1"])
    s2, b2 = _fold_bn(params["bn2"])
    w1 = _prep_conv_weights(params["w1"], s1, compute_dtype)
    w2 = _prep_conv_weights(params["w2"], s2, compute_dtype)
    b1 = b1.reshape(C_out, 1).astype(jnp.float32)
    b2 = b2.reshape(C_out, 1).astype(jnp.float32)
    has_proj = "ws" in params

    bt = _largest_divisor(N, batch_tile)

    args, in_specs = [], []
    if stride == 1:
        args.append(x_ncl)
        in_specs.append(pl.BlockSpec((bt, C_in, L), lambda n: (n, 0, 0)))
    else:
        # One-time even/odd de-interleave so the kernel never needs per-tap
        # lane-strided gathers for the downsampling conv / shortcut.
        x_ph = jnp.stack([x_ncl[:, :, 0::2], x_ncl[:, :, 1::2]], axis=1)
        args.append(x_ph)                                   # (N, 2, C_in, L1)
        in_specs.append(pl.BlockSpec((bt, 2, C_in, L1), lambda n: (n, 0, 0, 0)))

    args += [w1, b1, w2, b2]
    in_specs += [
        pl.BlockSpec((K, C_out, C_in), lambda n: (0, 0, 0)),
        pl.BlockSpec((C_out, 1), lambda n: (0, 0)),
        pl.BlockSpec((K, C_out, C_out), lambda n: (0, 0, 0)),
        pl.BlockSpec((C_out, 1), lambda n: (0, 0)),
    ]
    if has_proj:
        ss, bs = _fold_bn(params["bns"])
        ws = (params["ws"][:, :, 0] * ss[:, None]).astype(compute_dtype)
        args += [ws, bs.reshape(C_out, 1).astype(jnp.float32)]
        in_specs += [
            pl.BlockSpec((C_out, C_in), lambda n: (0, 0)),
            pl.BlockSpec((C_out, 1), lambda n: (0, 0)),
        ]

    kernel = functools.partial(_basic_block_kernel, stride=stride,
                               has_proj=has_proj)
    return pl.pallas_call(
        kernel,
        out_shape=jax.ShapeDtypeStruct((N, C_out, L1), x_ncl.dtype),
        grid=(N // bt,),
        in_specs=in_specs,
        out_specs=pl.BlockSpec((bt, C_out, L1), lambda n: (n, 0, 0)),
        compiler_params=pltpu.CompilerParams(
            dimension_semantics=("parallel",),
            vmem_limit_bytes=vmem_limit_bytes),
    )(*args)


# ----------------------------------------------------------------------------
# Pure-JAX reference (for validation)
# ----------------------------------------------------------------------------
def _ref_forward(x, p, stride):
    def conv(x, w, s, pad):
        return jax.lax.conv_general_dilated(
            x, w, (s,), [(pad, pad)], dimension_numbers=("NCH", "OIH", "NCH"))

    def bn(x, d):
        s = d["gamma"] / jnp.sqrt(d["var"] + _BN_EPS)
        b = d["beta"] - d["mean"] * s
        return x * s[None, :, None] + b[None, :, None]

    out = jax.nn.relu(bn(conv(x, p["w1"], stride, 1), p["bn1"]))
    out = bn(conv(out, p["w2"], 1, 1), p["bn2"])
    sc = bn(conv(x, p["ws"], stride, 0), p["bns"]) if "ws" in p else x
    return jax.nn.relu(out + sc)


# ----------------------------------------------------------------------------
# Deterministic parameter init
# ----------------------------------------------------------------------------
def _make_bn(key, planes):
    k1, k2, k3, k4 = jax.random.split(key, 4)
    return {
        "gamma": jax.random.uniform(k1, (planes,), jnp.float32, 0.5, 1.5),
        "beta": jax.random.normal(k2, (planes,), jnp.float32) * 0.1,
        "mean": jax.random.normal(k3, (planes,), jnp.float32) * 0.1,
        "var": jax.random.uniform(k4, (planes,), jnp.float32, 0.5, 1.5),
    }


def make_params(key, in_planes, planes, stride):
    ks = jax.random.split(key, 6)
    p = {
        "w1": jax.random.normal(ks[0], (planes, in_planes, 3), jnp.float32) * 0.2,
        "bn1": _make_bn(ks[1], planes),
        "w2": jax.random.normal(ks[2], (planes, planes, 3), jnp.float32) * 0.2,
        "bn2": _make_bn(ks[3], planes),
    }
    if stride != 1 or in_planes != planes:
        p["ws"] = jax.random.normal(ks[4], (planes, in_planes, 1), jnp.float32) * 0.2
        p["bns"] = _make_bn(ks[5], planes)
    return p


# ----------------------------------------------------------------------------
if __name__ == "__main__":
    key = jax.random.PRNGKey(0)
    k = jax.random.split(key, 6)

    # Case 1: downsampling block (stride=2, channel expansion -> conv shortcut)
    N, in_planes, planes, L = 2, 4, 8, 16
    x1 = jax.random.normal(k[0], (N, in_planes, L), jnp.float32)
    p1 = make_params(k[1], in_planes, planes, 2)
    out1 = jax.block_until_ready(basic_block_1d(x1, p1, 2))
    ref1 = _ref_forward(x1, p1, 2)
    assert out1.shape == (N, planes, L // 2), out1.shape
    assert jnp.allclose(out1, ref1, atol=1e-4, rtol=1e-4), "mismatch (stride=2)"

    # Case 2: identity-shortcut block (stride=1, in_planes == planes)
    x2 = jax.random.normal(k[2], (N, planes, L), jnp.float32)
    p2 = make_params(k[3], planes, planes, 1)
    out2 = jax.block_until_ready(basic_block_1d(x2, p2, 1))
    ref2 = _ref_forward(x2, p2, 1)
    assert out2.shape == (N, planes, L), out2.shape
    assert jnp.allclose(out2, ref2, atol=1e-4, rtol=1e-4), "mismatch (stride=1)"

    # Case 3: projection shortcut with stride=1 (channel change only)
    x3 = jax.random.normal(k[4], (N, in_planes, L), jnp.float32)
    p3 = make_params(k[5], in_planes, planes, 1)
    out3 = jax.block_until_ready(basic_block_1d(x3, p3, 1))
    ref3 = _ref_forward(x3, p3, 1)
    assert out3.shape == (N, planes, L), out3.shape
    assert jnp.allclose(out3, ref3, atol=1e-4, rtol=1e-4), "mismatch (proj, stride=1)"

    # bf16 MXU path (matmul inputs bf16, f32 accumulation) -> looser tolerance.
    out1_bf16 = jax.block_until_ready(
        basic_block_1d(x1, p1, 2, compute_dtype=jnp.bfloat16))
    assert jnp.allclose(out1_bf16, ref1, atol=1e-1, rtol=1e-1), "mismatch (bf16)"

    print("KERNEL_OK")
</pallas_src>

<mosaic_0001>
module attributes {stable_mosaic.version = 11 : i64} {
  func.func @_basic_block_kernel(%arg0: i32, %arg1: memref<2x2x4x8xf32, #tpu.memory_space<vmem>>, %arg2: memref<3x8x4xf32, #tpu.memory_space<vmem>>, %arg3: memref<8x1xf32, #tpu.memory_space<vmem>>, %arg4: memref<3x8x8xf32, #tpu.memory_space<vmem>>, %arg5: memref<8x1xf32, #tpu.memory_space<vmem>>, %arg6: memref<8x4xf32, #tpu.memory_space<vmem>>, %arg7: memref<8x1xf32, #tpu.memory_space<vmem>>, %arg8: memref<2x8x8xf32, #tpu.memory_space<vmem>>) attributes {dimension_semantics = [#tpu.dimension_semantics<parallel>], iteration_bounds = array<i64: 1>, scalar_prefetch = 0 : i64, scratch_operands = 0 : i64, tpu.core_type = #tpu.core_type<tc>, window_params = [{transform_indices = @transform_0, window_bounds = array<i64: 2, 2, 4, 8>}, {pipeline_mode = #tpu.pipeline_mode<synchronous>, transform_indices = @transform_1, window_bounds = array<i64: 3, 8, 4>}, {pipeline_mode = #tpu.pipeline_mode<synchronous>, transform_indices = @transform_2, window_bounds = array<i64: 8, 1>}, {pipeline_mode = #tpu.pipeline_mode<synchronous>, transform_indices = @transform_3, window_bounds = array<i64: 3, 8, 8>}, {pipeline_mode = #tpu.pipeline_mode<synchronous>, transform_indices = @transform_4, window_bounds = array<i64: 8, 1>}, {pipeline_mode = #tpu.pipeline_mode<synchronous>, transform_indices = @transform_5, window_bounds = array<i64: 8, 4>}, {pipeline_mode = #tpu.pipeline_mode<synchronous>, transform_indices = @transform_6, window_bounds = array<i64: 8, 1>}, {transform_indices = @transform_7, window_bounds = array<i64: 2, 8, 8>}]} {
    %c0 = arith.constant 0 : index
    %c0_0 = arith.constant 0 : index
    %c0_1 = arith.constant 0 : index
    %0 = vector.load %arg2[%c0, %c0_0, %c0_1] : memref<3x8x4xf32, #tpu.memory_space<vmem>>, vector<3x8x4xf32>
    %c0_2 = arith.constant 0 : index
    %c0_3 = arith.constant 0 : index
    %c0_4 = arith.constant 0 : index
    %1 = vector.load %arg4[%c0_2, %c0_3, %c0_4] : memref<3x8x8xf32, #tpu.memory_space<vmem>>, vector<3x8x8xf32>
    %c0_5 = arith.constant 0 : index
    %c0_6 = arith.constant 0 : index
    %2 = vector.load %arg3[%c0_5, %c0_6] : memref<8x1xf32, #tpu.memory_space<vmem>>, vector<8x1xf32>
    %c0_7 = arith.constant 0 : index
    %c0_8 = arith.constant 0 : index
    %3 = vector.load %arg5[%c0_7, %c0_8] : memref<8x1xf32, #tpu.memory_space<vmem>>, vector<8x1xf32>
    %c0_9 = arith.constant 0 : index
    %c0_10 = arith.constant 0 : index
    %4 = vector.load %arg6[%c0_9, %c0_10] : memref<8x4xf32, #tpu.memory_space<vmem>>, vector<8x4xf32>
    %c0_11 = arith.constant 0 : index
    %c0_12 = arith.constant 0 : index
    %5 = vector.load %arg7[%c0_11, %c0_12] : memref<8x1xf32, #tpu.memory_space<vmem>>, vector<8x1xf32>
    %c0_13 = arith.constant 0 : index
    %c0_14 = arith.constant 0 : index
    %c0_15 = arith.constant 0 : index
    %c0_16 = arith.constant 0 : index
    %6 = vector.load %arg1[%c0_13, %c0_14, %c0_15, %c0_16] : memref<2x2x4x8xf32, #tpu.memory_space<vmem>>, vector<1x2x4x8xf32>
    %7 = vector.shape_cast %6 : vector<1x2x4x8xf32> to vector<2x4x8xf32>
    %8 = vector.extract_strided_slice %7 {offsets = [0, 0, 0], sizes = [1, 4, 8], strides = [1, 1, 1]} : vector<2x4x8xf32> to vector<1x4x8xf32>
    %9 = vector.shape_cast %8 : vector<1x4x8xf32> to vector<4x8xf32>
    %10 = vector.extract_strided_slice %7 {offsets = [1, 0, 0], sizes = [1, 4, 8], strides = [1, 1, 1]} : vector<2x4x8xf32> to vector<1x4x8xf32>
    %11 = vector.shape_cast %10 : vector<1x4x8xf32> to vector<4x8xf32>
    %cst = arith.constant 0.000000e+00 : f32
    %12 = vector.broadcast %cst : f32 to vector<4x1xf32>
    %13 = vector.extract_strided_slice %11 {offsets = [0, 0], sizes = [4, 7], strides = [1, 1]} : vector<4x8xf32> to vector<4x7xf32>
    %14 = tpu.concatenate %12, %13 in 1 : vector<4x1xf32>, vector<4x7xf32> -> vector<4x8xf32>
    %15 = vector.extract_strided_slice %0 {offsets = [0, 0, 0], sizes = [1, 8, 4], strides = [1, 1, 1]} : vector<3x8x4xf32> to vector<1x8x4xf32>
    %16 = vector.shape_cast %15 : vector<1x8x4xf32> to vector<8x4xf32>
    %cst_17 = arith.constant dense<0.000000e+00> : vector<8x8xf32>
    %17 = tpu.matmul %16, %14, %cst_17 {dimension_numbers = #tpu.dot_dimension_numbers<[1], [0], [0], [1], [0, 0, 1, 1], [], []>} : vector<8x4xf32>, vector<4x8xf32>, vector<8x8xf32> -> vector<8x8xf32>
    %18 = vector.extract_strided_slice %0 {offsets = [1, 0, 0], sizes = [1, 8, 4], strides = [1, 1, 1]} : vector<3x8x4xf32> to vector<1x8x4xf32>
    %19 = vector.shape_cast %18 : vector<1x8x4xf32> to vector<8x4xf32>
    %cst_18 = arith.constant dense<0.000000e+00> : vector<8x8xf32>
    %20 = tpu.matmul %19, %9, %cst_18 {dimension_numbers = #tpu.dot_dimension_numbers<[1], [0], [0], [1], [0, 0, 1, 1], [], []>} : vector<8x4xf32>, vector<4x8xf32>, vector<8x8xf32> -> vector<8x8xf32>
    %21 = arith.addf %17, %20 : vector<8x8xf32>
    %22 = vector.extract_strided_slice %0 {offsets = [2, 0, 0], sizes = [1, 8, 4], strides = [1, 1, 1]} : vector<3x8x4xf32> to vector<1x8x4xf32>
    %23 = vector.shape_cast %22 : vector<1x8x4xf32> to vector<8x4xf32>
    %cst_19 = arith.constant dense<0.000000e+00> : vector<8x8xf32>
    %24 = tpu.matmul %23, %11, %cst_19 {dimension_numbers = #tpu.dot_dimension_numbers<[1], [0], [0], [1], [0, 0, 1, 1], [], []>} : vector<8x4xf32>, vector<4x8xf32>, vector<8x8xf32> -> vector<8x8xf32>
    %25 = arith.addf %21, %24 : vector<8x8xf32>
    %26 = vector.broadcast %2 : vector<8x1xf32> to vector<8x8xf32>
    %27 = arith.addf %25, %26 : vector<8x8xf32>
    %cst_20 = arith.constant 0.000000e+00 : f32
    %28 = vector.broadcast %cst_20 : f32 to vector<8x8xf32>
    %29 = arith.maximumf %27, %28 : vector<8x8xf32>
    %cst_21 = arith.constant 0.000000e+00 : f32
    %30 = vector.broadcast %cst_21 : f32 to vector<8x1xf32>
    %31 = tpu.concatenate %30, %29, %30 in 1 : vector<8x1xf32>, vector<8x8xf32>, vector<8x1xf32> -> vector<8x10xf32>
    %32 = vector.extract_strided_slice %1 {offsets = [0, 0, 0], sizes = [1, 8, 8], strides = [1, 1, 1]} : vector<3x8x8xf32> to vector<1x8x8xf32>
    %33 = vector.shape_cast %32 : vector<1x8x8xf32> to vector<8x8xf32>
    %34 = vector.extract_strided_slice %31 {offsets = [0, 0], sizes = [8, 8], strides = [1, 1]} : vector<8x10xf32> to vector<8x8xf32>
    %cst_22 = arith.constant dense<0.000000e+00> : vector<8x8xf32>
    %35 = tpu.matmul %33, %34, %cst_22 {dimension_numbers = #tpu.dot_dimension_numbers<[1], [0], [0], [1], [0, 0, 1, 1], [], []>} : vector<8x8xf32>, vector<8x8xf32>, vector<8x8xf32> -> vector<8x8xf32>
    %36 = vector.extract_strided_slice %1 {offsets = [1, 0, 0], sizes = [1, 8, 8], strides = [1, 1, 1]} : vector<3x8x8xf32> to vector<1x8x8xf32>
    %37 = vector.shape_cast %36 : vector<1x8x8xf32> to vector<8x8xf32>
    %38 = vector.extract_strided_slice %31 {offsets = [0, 1], sizes = [8, 8], strides = [1, 1]} : vector<8x10xf32> to vector<8x8xf32>
    %cst_23 = arith.constant dense<0.000000e+00> : vector<8x8xf32>
    %39 = tpu.matmul %37, %38, %cst_23 {dimension_numbers = #tpu.dot_dimension_numbers<[1], [0], [0], [1], [0, 0, 1, 1], [], []>} : vector<8x8xf32>, vector<8x8xf32>, vector<8x8xf32> -> vector<8x8xf32>
    %40 = arith.addf %35, %39 : vector<8x8xf32>
    %41 = vector.extract_strided_slice %1 {offsets = [2, 0, 0], sizes = [1, 8, 8], strides = [1, 1, 1]} : vector<3x8x8xf32> to vector<1x8x8xf32>
    %42 = vector.shape_cast %41 : vector<1x8x8xf32> to vector<8x8xf32>
    %43 = vector.extract_strided_slice %31 {offsets = [0, 2], sizes = [8, 8], strides = [1, 1]} : vector<8x10xf32> to vector<8x8xf32>
    %cst_24 = arith.constant dense<0.000000e+00> : vector<8x8xf32>
    %44 = tpu.matmul %42, %43, %cst_24 {dimension_numbers = #tpu.dot_dimension_numbers<[1], [0], [0], [1], [0, 0, 1, 1], [], []>} : vector<8x8xf32>, vector<8x8xf32>, vector<8x8xf32> -> vector<8x8xf32>
    %45 = arith.addf %40, %44 : vector<8x8xf32>
    %46 = vector.broadcast %3 : vector<8x1xf32> to vector<8x8xf32>
    %47 = arith.addf %45, %46 : vector<8x8xf32>
    %cst_25 = arith.constant dense<0.000000e+00> : vector<8x8xf32>
    %48 = tpu.matmul %4, %9, %cst_25 {dimension_numbers = #tpu.dot_dimension_numbers<[1], [0], [0], [1], [0, 0, 1, 1], [], []>} : vector<8x4xf32>, vector<4x8xf32>, vector<8x8xf32> -> vector<8x8xf32>
    %49 = vector.broadcast %5 : vector<8x1xf32> to vector<8x8xf32>
    %50 = arith.addf %48, %49 : vector<8x8xf32>
    %51 = arith.addf %47, %50 : vector<8x8xf32>
    %cst_26 = arith.constant 0.000000e+00 : f32
    %52 = vector.broadcast %cst_26 : f32 to vector<8x8xf32>
    %53 = arith.maximumf %51, %52 : vector<8x8xf32>
    %c0_27 = arith.constant 0 : index
    %c0_28 = arith.constant 0 : index
    %c0_29 = arith.constant 0 : index
    %54 = vector.load %arg8[%c0_27, %c0_28, %c0_29] : memref<2x8x8xf32, #tpu.memory_space<vmem>>, vector<1x8x8xf32>
    %55 = vector.shape_cast %54 : vector<1x8x8xf32> to vector<8x8xf32>
    %56 = vector.shape_cast %53 : vector<8x8xf32> to vector<1x8x8xf32>
    tpu.vector_store %arg8[%c0_27, %c0_28, %c0_29], %56 {strides = array<i32>} : memref<2x8x8xf32, #tpu.memory_space<vmem>>, vector<1x8x8xf32>,
    %c1 = arith.constant 1 : index
    %c0_30 = arith.constant 0 : index
    %c0_31 = arith.constant 0 : index
    %c0_32 = arith.constant 0 : index
    %57 = vector.load %arg1[%c1, %c0_30, %c0_31, %c0_32] : memref<2x2x4x8xf32, #tpu.memory_space<vmem>>, vector<1x2x4x8xf32>
    %58 = vector.shape_cast %57 : vector<1x2x4x8xf32> to vector<2x4x8xf32>
    %59 = vector.extract_strided_slice %58 {offsets = [0, 0, 0], sizes = [1, 4, 8], strides = [1, 1, 1]} : vector<2x4x8xf32> to vector<1x4x8xf32>
    %60 = vector.shape_cast %59 : vector<1x4x8xf32> to vector<4x8xf32>
    %61 = vector.extract_strided_slice %58 {offsets = [1, 0, 0], sizes = [1, 4, 8], strides = [1, 1, 1]} : vector<2x4x8xf32> to vector<1x4x8xf32>
    %62 = vector.shape_cast %61 : vector<1x4x8xf32> to vector<4x8xf32>
    %cst_33 = arith.constant 0.000000e+00 : f32
    %63 = vector.broadcast %cst_33 : f32 to vector<4x1xf32>
    %64 = vector.extract_strided_slice %62 {offsets = [0, 0], sizes = [4, 7], strides = [1, 1]} : vector<4x8xf32> to vector<4x7xf32>
    %65 = tpu.concatenate %63, %64 in 1 : vector<4x1xf32>, vector<4x7xf32> -> vector<4x8xf32>
    %66 = vector.extract_strided_slice %0 {offsets = [0, 0, 0], sizes = [1, 8, 4], strides = [1, 1, 1]} : vector<3x8x4xf32> to vector<1x8x4xf32>
    %67 = vector.shape_cast %66 : vector<1x8x4xf32> to vector<8x4xf32>
    %cst_34 = arith.constant dense<0.000000e+00> : vector<8x8xf32>
    %68 = tpu.matmul %67, %65, %cst_34 {dimension_numbers = #tpu.dot_dimension_numbers<[1], [0], [0], [1], [0, 0, 1, 1], [], []>} : vector<8x4xf32>, vector<4x8xf32>, vector<8x8xf32> -> vector<8x8xf32>
    %69 = vector.extract_strided_slice %0 {offsets = [1, 0, 0], sizes = [1, 8, 4], strides = [1, 1, 1]} : vector<3x8x4xf32> to vector<1x8x4xf32>
    %70 = vector.shape_cast %69 : vector<1x8x4xf32> to vector<8x4xf32>
    %cst_35 = arith.constant dense<0.000000e+00> : vector<8x8xf32>
    %71 = tpu.matmul %70, %60, %cst_35 {dimension_numbers = #tpu.dot_dimension_numbers<[1], [0], [0], [1], [0, 0, 1, 1], [], []>} : vector<8x4xf32>, vector<4x8xf32>, vector<8x8xf32> -> vector<8x8xf32>
    %72 = arith.addf %68, %71 : vector<8x8xf32>
    %73 = vector.extract_strided_slice %0 {offsets = [2, 0, 0], sizes = [1, 8, 4], strides = [1, 1, 1]} : vector<3x8x4xf32> to vector<1x8x4xf32>
    %74 = vector.shape_cast %73 : vector<1x8x4xf32> to vector<8x4xf32>
    %cst_36 = arith.constant dense<0.000000e+00> : vector<8x8xf32>
    %75 = tpu.matmul %74, %62, %cst_36 {dimension_numbers = #tpu.dot_dimension_numbers<[1], [0], [0], [1], [0, 0, 1, 1], [], []>} : vector<8x4xf32>, vector<4x8xf32>, vector<8x8xf32> -> vector<8x8xf32>
    %76 = arith.addf %72, %75 : vector<8x8xf32>
    %77 = vector.broadcast %2 : vector<8x1xf32> to vector<8x8xf32>
    %78 = arith.addf %76, %77 : vector<8x8xf32>
    %cst_37 = arith.constant 0.000000e+00 : f32
    %79 = vector.broadcast %cst_37 : f32 to vector<8x8xf32>
    %80 = arith.maximumf %78, %79 : vector<8x8xf32>
    %cst_38 = arith.constant 0.000000e+00 : f32
    %81 = vector.broadcast %cst_38 : f32 to vector<8x1xf32>
    %82 = tpu.concatenate %81, %80, %81 in 1 : vector<8x1xf32>, vector<8x8xf32>, vector<8x1xf32> -> vector<8x10xf32>
    %83 = vector.extract_strided_slice %1 {offsets = [0, 0, 0], sizes = [1, 8, 8], strides = [1, 1, 1]} : vector<3x8x8xf32> to vector<1x8x8xf32>
    %84 = vector.shape_cast %83 : vector<1x8x8xf32> to vector<8x8xf32>
    %85 = vector.extract_strided_slice %82 {offsets = [0, 0], sizes = [8, 8], strides = [1, 1]} : vector<8x10xf32> to vector<8x8xf32>
    %cst_39 = arith.constant dense<0.000000e+00> : vector<8x8xf32>
    %86 = tpu.matmul %84, %85, %cst_39 {dimension_numbers = #tpu.dot_dimension_numbers<[1], [0], [0], [1], [0, 0, 1, 1], [], []>} : vector<8x8xf32>, vector<8x8xf32>, vector<8x8xf32> -> vector<8x8xf32>
    %87 = vector.extract_strided_slice %1 {offsets = [1, 0, 0], sizes = [1, 8, 8], strides = [1, 1, 1]} : vector<3x8x8xf32> to vector<1x8x8xf32>
    %88 = vector.shape_cast %87 : vector<1x8x8xf32> to vector<8x8xf32>
    %89 = vector.extract_strided_slice %82 {offsets = [0, 1], sizes = [8, 8], strides = [1, 1]} : vector<8x10xf32> to vector<8x8xf32>
    %cst_40 = arith.constant dense<0.000000e+00> : vector<8x8xf32>
    %90 = tpu.matmul %88, %89, %cst_40 {dimension_numbers = #tpu.dot_dimension_numbers<[1], [0], [0], [1], [0, 0, 1, 1], [], []>} : vector<8x8xf32>, vector<8x8xf32>, vector<8x8xf32> -> vector<8x8xf32>
    %91 = arith.addf %86, %90 : vector<8x8xf32>
    %92 = vector.extract_strided_slice %1 {offsets = [2, 0, 0], sizes = [1, 8, 8], strides = [1, 1, 1]} : vector<3x8x8xf32> to vector<1x8x8xf32>
    %93 = vector.shape_cast %92 : vector<1x8x8xf32> to vector<8x8xf32>
    %94 = vector.extract_strided_slice %82 {offsets = [0, 2], sizes = [8, 8], strides = [1, 1]} : vector<8x10xf32> to vector<8x8xf32>
    %cst_41 = arith.constant dense<0.000000e+00> : vector<8x8xf32>
    %95 = tpu.matmul %93, %94, %cst_41 {dimension_numbers = #tpu.dot_dimension_numbers<[1], [0], [0], [1], [0, 0, 1, 1], [], []>} : vector<8x8xf32>, vector<8x8xf32>, vector<8x8xf32> -> vector<8x8xf32>
    %96 = arith.addf %91, %95 : vector<8x8xf32>
    %97 = vector.broadcast %3 : vector<8x1xf32> to vector<8x8xf32>
    %98 = arith.addf %96, %97 : vector<8x8xf32>
    %cst_42 = arith.constant dense<0.000000e+00> : vector<8x8xf32>
    %99 = tpu.matmul %4, %60, %cst_42 {dimension_numbers = #tpu.dot_dimension_numbers<[1], [0], [0], [1], [0, 0, 1, 1], [], []>} : vector<8x4xf32>, vector<4x8xf32>, vector<8x8xf32> -> vector<8x8xf32>
    %100 = vector.broadcast %5 : vector<8x1xf32> to vector<8x8xf32>
    %101 = arith.addf %99, %100 : vector<8x8xf32>
    %102 = arith.addf %98, %101 : vector<8x8xf32>
    %cst_43 = arith.constant 0.000000e+00 : f32
    %103 = vector.broadcast %cst_43 : f32 to vector<8x8xf32>
    %104 = arith.maximumf %102, %103 : vector<8x8xf32>
    %c1_44 = arith.constant 1 : index
    %c0_45 = arith.constant 0 : index
    %c0_46 = arith.constant 0 : index
    %105 = vector.load %arg8[%c1_44, %c0_45, %c0_46] : memref<2x8x8xf32, #tpu.memory_space<vmem>>, vector<1x8x8xf32>
    %106 = vector.shape_cast %105 : vector<1x8x8xf32> to vector<8x8xf32>
    %107 = vector.shape_cast %104 : vector<8x8xf32> to vector<1x8x8xf32>
    tpu.vector_store %arg8[%c1_44, %c0_45, %c0_46], %107 {strides = array<i32>} : memref<2x8x8xf32, #tpu.memory_space<vmem>>, vector<1x8x8xf32>,
    return
  }
  func.func @transform_0(%arg0: i32) -> (i32, i32, i32, i32) {
    %c0_i32 = arith.constant 0 : i32
    %c0_i32_0 = arith.constant 0 : i32
    %c0_i32_1 = arith.constant 0 : i32
    %c0_i32_2 = arith.constant 0 : i32
    return %arg0, %c0_i32, %c0_i32_0, %c0_i32_1 : i32, i32, i32, i32
  }
  func.func @transform_1(%arg0: i32) -> (i32, i32, i32) {
    %c0_i32 = arith.constant 0 : i32
    %c0_i32_0 = arith.constant 0 : i32
    %c0_i32_1 = arith.constant 0 : i32
    %c0_i32_2 = arith.constant 0 : i32
    return %c0_i32, %c0_i32_0, %c0_i32_1 : i32, i32, i32
  }
  func.func @transform_2(%arg0: i32) -> (i32, i32) {
    %c0_i32 = arith.constant 0 : i32
    %c0_i32_0 = arith.constant 0 : i32
    %c0_i32_1 = arith.constant 0 : i32
    return %c0_i32, %c0_i32_0 : i32, i32
  }
  func.func @transform_3(%arg0: i32) -> (i32, i32, i32) {
    %c0_i32 = arith.constant 0 : i32
    %c0_i32_0 = arith.constant 0 : i32
    %c0_i32_1 = arith.constant 0 : i32
    %c0_i32_2 = arith.constant 0 : i32
    return %c0_i32, %c0_i32_0, %c0_i32_1 : i32, i32, i32
  }
  func.func @transform_4(%arg0: i32) -> (i32, i32) {
    %c0_i32 = arith.constant 0 : i32
    %c0_i32_0 = arith.constant 0 : i32
    %c0_i32_1 = arith.constant 0 : i32
    return %c0_i32, %c0_i32_0 : i32, i32
  }
  func.func @transform_5(%arg0: i32) -> (i32, i32) {
    %c0_i32 = arith.constant 0 : i32
    %c0_i32_0 = arith.constant 0 : i32
    %c0_i32_1 = arith.constant 0 : i32
    return %c0_i32, %c0_i32_0 : i32, i32
  }
  func.func @transform_6(%arg0: i32) -> (i32, i32) {
    %c0_i32 = arith.constant 0 : i32
    %c0_i32_0 = arith.constant 0 : i32
    %c0_i32_1 = arith.constant 0 : i32
    return %c0_i32, %c0_i32_0 : i32, i32
  }
  func.func @transform_7(%arg0: i32) -> (i32, i32, i32) {
    %c0_i32 = arith.constant 0 : i32
    %c0_i32_0 = arith.constant 0 : i32
    %c0_i32_1 = arith.constant 0 : i32
    return %arg0, %c0_i32, %c0_i32_0 : i32, i32, i32
  }
}

</mosaic_0001>

<bundles_post_ra>
// kernel: tpu_custom_call.1
= control target key start
LH: loop header
LB: loop body
LE: loop exit
PB: predicated region body
PF: predicated region fallthrough
CT: control target
= control target key end

     0   :  { %vm49_vm0 = vcmask 1043456   ;;  %vm45_vm1 = vcmask 31744   ;;  %s512_s28 = smov 1   ;;  %s644_s0 = inlined_call_operand.vmem [shape: f32[2,2,4,8], index: 0, kind: input, shape index: {}]   ;;  %s645_s1 = inlined_call_operand.vmem [shape: f32[3,8,4], index: 1, kind: input, shape index: {}]   ;;  %s646_s2 = inlined_call_operand.vmem [shape: f32[8,1], index: 2, kind: input, shape index: {}]   ;;  %s647_s3 = inlined_call_operand.vmem [shape: f32[3,8,8], index: 3, kind: input, shape index: {}]   ;;  %s648_s4 = inlined_call_operand.vmem [shape: f32[8,1], index: 4, kind: input, shape index: {}]   ;;  %s649_s5 = inlined_call_operand.vmem [shape: f32[8,4], index: 5, kind: input, shape index: {}]   ;;  %s650_s6 = inlined_call_operand.vmem [shape: f32[8,1], index: 6, kind: input, shape index: {}]   ;;  %s651_s7 = inlined_call_operand.hbm [shape: f32[2,8,8], index: 7, kind: output, shape index: {}]  }
   0x1   :  { %v38_v0 = vld [vmem:[%s644_s0 + $0x4] sm:$0xf]  ;;  %v29_v1 = vld [vmem:[%s645_s1 + $0x10] sm:$0xff] }
   0x2   :  { %40 = vrot.lane.b32.xlu0 %v38_v0, %s512_s28  ;;  %454 = vmatpush.msk.msra.mxu2 %vm49_vm0, %v38_v0 }
   0x3   :  { %12 = vsyncpa [#allocation3], 0  ;;  %455 = vmatmul.msk.f32.vlgmr.msra.gmra.mxu2 %vm45_vm1, %v29_v1  ;;  %v37_v2 = vld [vmem:[%s644_s0] sm:$0xf]  ;;  %v28_v3 = vld [vmem:[%s645_s1 + $0x8] sm:$0xff]  ;;  %v513_v5 = vmov 0  }
   0x4   :  { %450 = vmatpush.msk.msra.mxu0 %vm49_vm0, %v37_v2  ;;  %460 = vmatpush.msk.msrb.mxu2 %vm49_vm0, %v37_v2  ;;  %v33_v4 = vld [vmem:[%s646_s2] sm:$0xff]  ;;  %vm43_vm2 = vcmask 7168   ;;  %vm137_vm3 = vcmask 72704   ;;  %s515_s2 = smov 127   ;;  %v463_v20 = vld [vmem:[%s644_s0 + $0xc] sm:$0xf] }
   0x5   :  { %451 = vmatmul.msk.f32.vlgmr.msra.gmra.mxu0 %vm45_vm1, %v28_v3  ;;  %483 = vset.pattern.permute.xlu0 %v513_v5  ;;  %v27_v7 = vld [vmem:[%s645_s1] sm:$0xff]  ;;  %s514_s1 = smov 126   ;;  %vm143_vm4 = vcmask 64512   ;;  %v32_v22 = vld [vmem:[%s647_s3 + $0x10] sm:$0xff]  ;;  %v462_v24 = vld [vmem:[%s644_s0 + $0x8] sm:$0xf] }
   0x6   :  { %484 = vset.pattern.permute.xlu1 %v513_v5  ;;  %485 = vset.pattern.permute.xlu2 %v513_v5  ;;  %v30_v21 = vld [vmem:[%s647_s3] sm:$0xff]  ;;  %v31_v27 = vld [vmem:[%s647_s3 + $0x8] sm:$0xff]  ;;  %s438_s29 = sshll.u32 %s651_s7, 4  ;;  %s517_s30 = smov 128   ;;  %s439_s29 = int_to_ptr.hbm [resolvable:$true] %s438_s29 }
   0x7   :  { %v35_v29 = vld [vmem:[%s649_s5] sm:$0xff]  ;;  %s518_s8 = smov 8  }
   0x8   :  { %v34_v42 = vld [vmem:[%s648_s4] sm:$0xff]  ;;  %s516_s4 = smov [#allocation2]  }
   0x9   :  { %v36_v46 = vld [vmem:[%s650_s6] sm:$0xff]  ;;  %s436_s6 = sshll.u32 %s516_s4, 4  ;;  %s437_s6 = int_to_ptr.vmem [resolvable:$true] %s436_s6 }
   0xa   :  { %127 = vperm.xlu0 %483, %v33_v4  }
   0xb   :  { %461 = vmatmul.msk.f32.vlgmr.msrb.gmra.mxu2 %vm45_vm1, %v35_v29 }
  0x74   :  { %v41_v6 = vpop.permute.xlu0 %40 }
  0x75   :  { %v44_v8 = vsel %vm43_vm2, 0.0, %v41_v6 }
  0x76   :  { %452 = vmatpush.msk.msra.mxu1 %vm49_vm0, %v44_v8 }
  0x77   :  { %453 = vmatmul.msk.f32.vlgmr.msra.gmra.mxu1 %vm45_vm1, %v27_v7 }
  0x7c   :  { %v128_v13 = vpop.permute.xlu0 %127 }
  0x82   :  { %v70_v9 = vpop.f32.mrf.mxu0 }
  0x86   :  { %v121_v11 = vpop.f32.mrf.mxu2 }
  0x8e   :  { %v248_v49 = vpop.f32.mrf.mxu2 }
  0xf4   :  { %v96_v10 = vpop.f32.mrf.mxu1 }
  0xf5   :  { %v97_v12 = vadd.f32 %v96_v10, %v70_v9 }
  0xf7   :  { %v124_v14 = vadd.f32 %v121_v11, %v97_v12 }
  0xf9   :  { %v130_v15 = vadd.f32 %v128_v13, %v124_v14 }
  0xfb   :  { %v131_v16 = vmax.f32 %v130_v15, 0.0 }
  0xfd   :  { %133 = vrot.lane.b32.xlu1 %v131_v16, %s512_s28 }
 0x16f   :  { %v134_v17 = vpop.permute.xlu1 %133 }
 0x170   :  { %v136_v18 = vsel %vm43_vm2, 0.0, %v134_v17 }
 0x171   :  { %457 = vmatpush.msk.msrb.mxu0 %vm137_vm3, %v136_v18  ;;  %v138_v19 = vsel %vm137_vm3, %v136_v18, 0.0 }
 0x172   :  { %190 = vrot.lane.b32.xlu2 %v138_v19, %s514_s1  ;;  %140 = vrot.lane.b32.xlu1 %v138_v19, %s515_s2 }
 0x173   :  { %458 = vmatmul.msk.f32.vlgmr.msrb.gmra.mxu0 %vm143_vm4, %v30_v21 }
 0x17a   :  { %258 = vrot.lane.b32.xlu2 %v463_v20, %s512_s28 }
 0x1cc   :  { %v191_v23 = vpop.permute.xlu2 %190 }
 0x1cd   :  { %211 = vmatpush.msrb.mxu1 %v191_v23 }
 0x1ce   :  { %459 = vmatmul.msk.f32.vlgmr.msrb.gmra.mxu1 %vm143_vm4, %v32_v22 }
 0x1cf   :  { %468 = vmatpush.msk.msra.mxu1 %vm49_vm0, %v463_v20 }
 0x1d1   :  { %474 = vmatpush.msk.msrb.mxu1 %vm49_vm0, %v462_v24 }
 0x1d4   :  { %v259_v25 = vpop.permute.xlu2 %258 }
 0x1d5   :  { %v261_v26 = vsel %vm43_vm2, 0.0, %v259_v25 }
 0x1d6   :  { %466 = vmatpush.msk.msra.mxu0 %vm49_vm0, %v261_v26  ;;  %469 = vmatmul.msk.f32.vlgmr.msra.gmra.mxu1 %vm45_vm1, %v29_v1 }
 0x1d7   :  { %467 = vmatmul.msk.f32.vlgmr.msra.gmra.mxu0 %vm45_vm1, %v27_v7 }
 0x1de   :  { %475 = vmatmul.msk.f32.vlgmr.msrb.gmra.mxu1 %vm45_vm1, %v35_v29 }
 0x1e4   :  { %v141_v28 = vpop.permute.xlu1 %140 }
 0x1e5   :  { %162 = vmatpush.msra.mxu3 %v141_v28 }
 0x1e6   :  { %456 = vmatmul.msk.f32.vlgmr.msra.gmra.mxu3 %vm143_vm4, %v31_v27 }
 0x1e7   :  { %464 = vmatpush.msk.msrb.mxu3 %vm49_vm0, %v462_v24 }
 0x1ee   :  { %465 = vmatmul.msk.f32.vlgmr.msrb.gmra.mxu3 %vm45_vm1, %v28_v3 }
 0x1f0   :  { %v187_v30 = vpop.f32.mrf.mxu0 }
 0x24b   :  { %v213_v31 = vpop.f32.mrf.mxu1 }
 0x253   :  { %v327_v37 = vpop.f32.mrf.mxu1 }
 0x254   :  { %v305_v35 = vpop.f32.mrf.mxu0 }
 0x25b   :  { %v425_v59 = vpop.f32.mrf.mxu1 }
 0x269   :  { %v164_v32 = vpop.f32.mrf.mxu3 }
 0x26a   :  { %v188_v33 = vadd.f32 %v187_v30, %v164_v32 }
 0x26c   :  { %v216_v34 = vadd.f32 %v213_v31, %v188_v33 }
 0x271   :  { %v282_v36 = vpop.f32.mrf.mxu3 }
 0x272   :  { %v306_v38 = vadd.f32 %v305_v35, %v282_v36 }
 0x274   :  { %v330_v39 = vadd.f32 %v327_v37, %v306_v38 }
 0x276   :  { %v331_v40 = vadd.f32 %v330_v39, %v128_v13 }
 0x278   :  { %v332_v41 = vmax.f32 %v331_v40, 0.0 }
 0x27a   :  { %334 = vrot.lane.b32.xlu1 %v332_v41, %s512_s28 }
 0x282   :  { %219 = vperm.xlu1 %484, %v34_v42  }
 0x2ec   :  { %v335_v43 = vpop.permute.xlu1 %334 }
 0x2ed   :  { %v337_v44 = vsel %vm43_vm2, 0.0, %v335_v43 }
 0x2ee   :  { %v338_v45 = vsel %vm137_vm3, %v337_v44, 0.0  ;;  %471 = vmatpush.msk.msra.mxu3 %vm137_vm3, %v337_v44 }
 0x2ef   :  { %383 = vrot.lane.b32.xlu0 %v338_v45, %s514_s1  ;;  %340 = vrot.lane.b32.xlu2 %v338_v45, %s515_s2 }
 0x2f0   :  { %472 = vmatmul.msk.f32.vlgmr.msra.gmra.mxu3 %vm143_vm4, %v30_v21 }
 0x2f4   :  { %v220_v48 = vpop.permute.xlu1 %219 }
 0x2f5   :  { %v222_v51 = vadd.f32 %v220_v48, %v216_v34 }
 0x2f7   :  { %225 = vperm.xlu2 %485, %v36_v46  }
 0x349   :  { %v341_v47 = vpop.permute.xlu2 %340 }
 0x34a   :  { %358 = vmatpush.msra.mxu2 %v341_v47 }
 0x34b   :  { %470 = vmatmul.msk.f32.vlgmr.msra.gmra.mxu2 %vm143_vm4, %v31_v27 }
 0x351   :  { %v226_v50 = vpop.permute.xlu2 %225 }
 0x352   :  { %v249_v52 = vadd.f32 %v248_v49, %v226_v50  ;;  %v426_v62 = vadd.f32 %v425_v59, %v226_v50 }
 0x354   :  { %v251_v53 = vadd.f32 %v249_v52, %v222_v51 }
 0x356   :  { %v252_v54 = vmax.f32 %v251_v53, 0.0 }
 0x358   :  { %253 = vst.msk [vmem:[#allocation2] sm:$0xff] %vm143_vm4, %v252_v54 }
 0x361   :  { %v384_v55 = vpop.permute.xlu0 %383 }
 0x362   :  { %401 = vmatpush.msrb.mxu0 %v384_v55 }
 0x363   :  { %473 = vmatmul.msk.f32.vlgmr.msrb.gmra.mxu0 %vm143_vm4, %v32_v22 }
 0x373   :  { %v380_v57 = vpop.f32.mrf.mxu3 }
 0x3ce   :  { %v360_v56 = vpop.f32.mrf.mxu2 }
 0x3cf   :  { %v381_v58 = vadd.f32 %v380_v57, %v360_v56 }
 0x3e0   :  { %v403_v60 = vpop.f32.mrf.mxu0 }
 0x3e1   :  { %v406_v61 = vadd.f32 %v403_v60, %v381_v58 }
 0x3e3   :  { %v407_v63 = vadd.f32 %v406_v61, %v220_v48 }
 0x3e5   :  { %v428_v0 = vadd.f32 %v426_v62, %v407_v63 }
 0x3e7   :  { %v429_v1 = vmax.f32 %v428_v0, 0.0 }
 0x3e9   :  { %431 = vst.msk [vmem:[#allocation2 + $0x8] sm:$0xff] %vm143_vm4, %v429_v1 }
 0x3ea   :  { %444 = dma.vmem_to_hbm [thread:$0]  %s437_s6, 256, %s439_s29, [#allocation3], %s517_s30, %s517_s30, %s518_s8  }
 0x3eb   :  { %510 = dma.done.wait [#allocation3], 256  }
 0x3ec   :  { %511 = vsyncadd [#allocation3], 4294967040 }
 0x3ed   :  { %449 = vsyncpa [#allocation3], 1 }

</bundles_post_ra>
